<compile_context>
chip_gen: v5e
topology: v5e:2x2
jax: 0.10.0
libtpu: 0.0.40
codegen_flags: <defaults>
</compile_context>

<pallas_src>
import math
import functools

import jax
import jax.numpy as jnp
from jax import lax
from jax.experimental import pallas as pl
from jax.experimental.pallas import tpu as pltpu

_GROUP = 8  # rows gathered per dense, sublane-aligned (8, emb) store


def _token_embedding_kernel(ids_ref, table_ref, out_ref, *, scale):
    # ids_ref  : SMEM (n_padded,) int32  — scalar-prefetched token ids (whole array)
    # table_ref: VMEM (vocab, emb)       — embedding table, resident (constant index_map)
    # out_ref  : VMEM (tb, emb)          — output tile for this grid step
    tb, _ = out_ref.shape
    base = pl.program_id(0) * tb

    def gather_group(g, carry):
        row0 = pl.multiple_of(g * _GROUP, _GROUP)
        # Per-row dynamic-slice gather from the VMEM table (no one-hot, no matmul).
        rows = [
            table_ref[pl.ds(ids_ref[base + row0 + r], 1), :]
            for r in range(_GROUP)
        ]
        # Assemble 8 rows -> one aligned (8, emb) block; scale in f32 post-gather.
        blk = jnp.concatenate(rows, axis=0).astype(jnp.float32) * scale
        out_ref[pl.ds(row0, _GROUP), :] = blk.astype(out_ref.dtype)
        return carry

    lax.fori_loop(0, tb // _GROUP, gather_group, 0)


def token_embedding(tokens, table, *, tb=512):
    """Equivalent of TokenEmbedding.forward: table[tokens] * sqrt(emb_size)."""
    vocab, emb = table.shape
    scale = float(math.sqrt(float(emb)))
    orig_shape = tokens.shape

    flat = tokens.reshape(-1).astype(jnp.int32)
    n = flat.shape[0]

    # Token tile: round tiny inputs up to a multiple of 8 (no padding beyond that);
    # otherwise use tb (multiple of 8).
    if n <= tb:
        tb_eff = max(_GROUP, ((n + _GROUP - 1) // _GROUP) * _GROUP)
    else:
        tb_eff = (tb // _GROUP) * _GROUP
    pad = (-n) % tb_eff
    if pad:
        flat = jnp.concatenate([flat, jnp.zeros((pad,), jnp.int32)])
    n_padded = n + pad
    num_blocks = n_padded // tb_eff

    itemsize = jnp.dtype(table.dtype).itemsize
    table_bytes = vocab * emb * itemsize
    out_tile_bytes = tb_eff * emb * itemsize
    # Table (double-buffered by the pipeline) + double-buffered output tile + slack.
    vmem_needed = 2 * table_bytes + 2 * out_tile_bytes + (1 << 20)
    vmem_limit = int(max(vmem_needed, 32 * 1024 * 1024))

    # Memory-bound gather: ~1 flop/output element (the scale); bytes dominate.
    cost = pl.CostEstimate(
        flops=int(n_padded * emb),
        transcendentals=0,
        bytes_accessed=int(
            n_padded * emb * itemsize          # output write
            + n_padded * emb * itemsize        # gathered rows read
            + table_bytes                      # table DMA'd once
            + n_padded * 4),                   # ids
    )

    out = pl.pallas_call(
        functools.partial(_token_embedding_kernel, scale=scale),
        out_shape=jax.ShapeDtypeStruct((n_padded, emb), table.dtype),
        grid_spec=pltpu.PrefetchScalarGridSpec(
            num_scalar_prefetch=1,             # ids -> SMEM, available to index_maps
            grid=(num_blocks,),
            in_specs=[
                # Full embedding table, constant block index -> fetched once, resident.
                pl.BlockSpec((vocab, emb), lambda i, ids: (0, 0)),
            ],
            out_specs=pl.BlockSpec((tb_eff, emb), lambda i, ids: (i, 0)),
        ),
        compiler_params=pltpu.CompilerParams(
            dimension_semantics=("parallel",),
            vmem_limit_bytes=vmem_limit,
        ),
        cost_estimate=cost,
    )(flat, table)

    if pad:
        out = out[:n]
    return out.reshape(*orig_shape, emb)


if __name__ == "__main__":
    vocab_size, emb_size = 32, 128
    seq_len, batch = 8, 2

    key = jax.random.PRNGKey(0)
    k_tab, k_tok = jax.random.split(key)

    # nn.Embedding default init: weight ~ N(0, 1)
    table = jax.random.normal(k_tab, (vocab_size, emb_size), dtype=jnp.float32)
    tokens = jax.random.randint(k_tok, (seq_len, batch), 0, vocab_size,
                                dtype=jnp.int32)

    out = token_embedding(tokens, table)
    out = jax.block_until_ready(out)

    # Pure-JAX reference of the exact forward semantics.
    ref = table[tokens] * math.sqrt(emb_size)
    assert out.shape == (seq_len, batch, emb_size)
    assert out.dtype == jnp.float32
    assert jnp.allclose(out, ref, atol=1e-5, rtol=1e-5)

    print("KERNEL_OK")
</pallas_src>

<mosaic_0001>
module attributes {stable_mosaic.version = 11 : i64} {
  func.func @_token_embedding_kernel(%arg0: i32, %arg1: memref<16xi32, #tpu.memory_space<smem>>, %arg2: memref<32x128xf32, #tpu.memory_space<vmem>>, %arg3: memref<16x128xf32, #tpu.memory_space<vmem>>) attributes {dimension_semantics = [#tpu.dimension_semantics<parallel>], iteration_bounds = array<i64: 1>, scalar_prefetch = 1 : i64, scratch_operands = 0 : i64, tpu.core_type = #tpu.core_type<tc>, window_params = [{pipeline_mode = #tpu.pipeline_mode<synchronous>, transform_indices = @transform_0, window_bounds = array<i64: 32, 128>}, {transform_indices = @transform_1, window_bounds = array<i64: 16, 128>}]} {
    %c16_i32 = arith.constant 16 : i32
    %0 = arith.muli %arg0, %c16_i32 : i32
    %c0_i32 = arith.constant 0 : i32
    %c2_i32 = arith.constant 2 : i32
    %1 = arith.addi %c0_i32, %c2_i32 : i32
    %c1_i32 = arith.constant 1 : i32
    scf.for %arg4 = %c0_i32 to %1 step %c1_i32  : i32 {
      %c8_i32 = arith.constant 8 : i32
      %2 = arith.muli %arg4, %c8_i32 : i32
      %3 = tpu.assume_multiple %2, 8 : i32
      %4 = arith.addi %0, %3 : i32
      %c0_i32_1 = arith.constant 0 : i32
      %5 = arith.addi %4, %c0_i32_1 : i32
      %6 = arith.index_cast %5 : i32 to index
      %7 = memref.load %arg1[%6] : memref<16xi32, #tpu.memory_space<smem>>
      %8 = arith.index_cast %7 : i32 to index
      %c0 = arith.constant 0 : index
      %9 = vector.load %arg2[%8, %c0] : memref<32x128xf32, #tpu.memory_space<vmem>>, vector<1x128xf32>
      %10 = arith.addi %0, %3 : i32
      %c1_i32_2 = arith.constant 1 : i32
      %11 = arith.addi %10, %c1_i32_2 : i32
      %12 = arith.index_cast %11 : i32 to index
      %13 = memref.load %arg1[%12] : memref<16xi32, #tpu.memory_space<smem>>
      %14 = arith.index_cast %13 : i32 to index
      %c0_3 = arith.constant 0 : index
      %15 = vector.load %arg2[%14, %c0_3] : memref<32x128xf32, #tpu.memory_space<vmem>>, vector<1x128xf32>
      %16 = arith.addi %0, %3 : i32
      %c2_i32_4 = arith.constant 2 : i32
      %17 = arith.addi %16, %c2_i32_4 : i32
      %18 = arith.index_cast %17 : i32 to index
      %19 = memref.load %arg1[%18] : memref<16xi32, #tpu.memory_space<smem>>
      %20 = arith.index_cast %19 : i32 to index
      %c0_5 = arith.constant 0 : index
      %21 = vector.load %arg2[%20, %c0_5] : memref<32x128xf32, #tpu.memory_space<vmem>>, vector<1x128xf32>
      %22 = arith.addi %0, %3 : i32
      %c3_i32 = arith.constant 3 : i32
      %23 = arith.addi %22, %c3_i32 : i32
      %24 = arith.index_cast %23 : i32 to index
      %25 = memref.load %arg1[%24] : memref<16xi32, #tpu.memory_space<smem>>
      %26 = arith.index_cast %25 : i32 to index
      %c0_6 = arith.constant 0 : index
      %27 = vector.load %arg2[%26, %c0_6] : memref<32x128xf32, #tpu.memory_space<vmem>>, vector<1x128xf32>
      %28 = arith.addi %0, %3 : i32
      %c4_i32 = arith.constant 4 : i32
      %29 = arith.addi %28, %c4_i32 : i32
      %30 = arith.index_cast %29 : i32 to index
      %31 = memref.load %arg1[%30] : memref<16xi32, #tpu.memory_space<smem>>
      %32 = arith.index_cast %31 : i32 to index
      %c0_7 = arith.constant 0 : index
      %33 = vector.load %arg2[%32, %c0_7] : memref<32x128xf32, #tpu.memory_space<vmem>>, vector<1x128xf32>
      %34 = arith.addi %0, %3 : i32
      %c5_i32 = arith.constant 5 : i32
      %35 = arith.addi %34, %c5_i32 : i32
      %36 = arith.index_cast %35 : i32 to index
      %37 = memref.load %arg1[%36] : memref<16xi32, #tpu.memory_space<smem>>
      %38 = arith.index_cast %37 : i32 to index
      %c0_8 = arith.constant 0 : index
      %39 = vector.load %arg2[%38, %c0_8] : memref<32x128xf32, #tpu.memory_space<vmem>>, vector<1x128xf32>
      %40 = arith.addi %0, %3 : i32
      %c6_i32 = arith.constant 6 : i32
      %41 = arith.addi %40, %c6_i32 : i32
      %42 = arith.index_cast %41 : i32 to index
      %43 = memref.load %arg1[%42] : memref<16xi32, #tpu.memory_space<smem>>
      %44 = arith.index_cast %43 : i32 to index
      %c0_9 = arith.constant 0 : index
      %45 = vector.load %arg2[%44, %c0_9] : memref<32x128xf32, #tpu.memory_space<vmem>>, vector<1x128xf32>
      %46 = arith.addi %0, %3 : i32
      %c7_i32 = arith.constant 7 : i32
      %47 = arith.addi %46, %c7_i32 : i32
      %48 = arith.index_cast %47 : i32 to index
      %49 = memref.load %arg1[%48] : memref<16xi32, #tpu.memory_space<smem>>
      %50 = arith.index_cast %49 : i32 to index
      %c0_10 = arith.constant 0 : index
      %51 = vector.load %arg2[%50, %c0_10] : memref<32x128xf32, #tpu.memory_space<vmem>>, vector<1x128xf32>
      %52 = tpu.concatenate %9, %15, %21, %27, %33, %39, %45, %51 in 0 : vector<1x128xf32>, vector<1x128xf32>, vector<1x128xf32>, vector<1x128xf32>, vector<1x128xf32>, vector<1x128xf32>, vector<1x128xf32>, vector<1x128xf32> -> vector<8x128xf32>
      %cst = arith.constant 11.3137083 : f32
      %53 = vector.broadcast %cst : f32 to vector<8x128xf32>
      %54 = arith.mulf %52, %53 : vector<8x128xf32>
      %55 = arith.index_cast %3 : i32 to index
      %c0_11 = arith.constant 0 : index
      %56 = vector.load %arg3[%55, %c0_11] : memref<16x128xf32, #tpu.memory_space<vmem>>, vector<8x128xf32>
      tpu.vector_store %arg3[%55, %c0_11], %54 {strides = array<i32>} : memref<16x128xf32, #tpu.memory_space<vmem>>, vector<8x128xf32>,
    }
    %c2_i32_0 = arith.constant 2 : i32
    return
  }
  func.func @transform_0(%arg0: i32, %arg1: memref<16xi32, #tpu.memory_space<smem>>) -> (i32, i32) {
    %c0_i32 = arith.constant 0 : i32
    %c0_i32_0 = arith.constant 0 : i32
    %c0_i32_1 = arith.constant 0 : i32
    return %c0_i32, %c0_i32_0 : i32, i32
  }
  func.func @transform_1(%arg0: i32, %arg1: memref<16xi32, #tpu.memory_space<smem>>) -> (i32, i32) {
    %c0_i32 = arith.constant 0 : i32
    %c0_i32_0 = arith.constant 0 : i32
    return %arg0, %c0_i32 : i32, i32
  }
}

</mosaic_0001>

<bundles_post_ra>
// kernel: tpu_custom_call.1
= control target key start
LH: loop header
LB: loop body
LE: loop exit
PB: predicated region body
PF: predicated region fallthrough
CT: control target
= control target key end

     0   :  { %s234_s12 = smov [#allocation3]   ;;  %s290_s0 = inlined_call_operand.hbm [shape: s32[16], index: 0, kind: input, shape index: {}]   ;;  %s291_s1 = inlined_call_operand.hbm [shape: f32[32,128], index: 1, kind: input, shape index: {}]   ;;  %s292_s2 = inlined_call_operand.hbm [shape: f32[16,128], index: 2, kind: output, shape index: {}]  }
   0x1   :  { %s8_s11 = sshll.u32 %s290_s0, 4  ;;  %s9_s11 = int_to_ptr.hbm [resolvable:$true] %s8_s11 }
   0x2   :  { %11 = dma.hbm_to_smem %s9_s11, 16, %s234_s12, [#allocation2] }
   0x3   :  { %224 = dma.done.wait [#allocation2], 16 }
   0x4   :  { %225 = vsyncadd [#allocation2], 4294967280 }
   0x5   :  { %14 = sfence }
   0x6   :  { %15 = vsyncpa [#allocation5], 0 }
   0x7   :  { %16 = vsyncpa [#allocation6], 0  ;;  %s21_s15 = sshll.u32 %s291_s1, 4  ;;  %s235_s16 = smov [#allocation4]   ;;  %s22_s15 = int_to_ptr.hbm [resolvable:$true] %s21_s15 }
   0x8   :  { %s23_s17 = sshll.u32 %s235_s16, 4  ;;  %s236_s18 = smov 128   ;;  %s24_s17 = int_to_ptr.vmem [resolvable:$true] %s23_s17 }
   0x9   :  { %s237_s19 = smov 8  }
   0xa   :  { %29 = dma.hbm_to_vmem [thread:$0]  %s22_s15, 512, %s24_s17, [#allocation5], %s236_s18, %s236_s18, %s237_s19  }
   0xb   :  { %226 = dma.done.wait [#allocation5], 512  }
   0xc   :  { %227 = vsyncadd [#allocation5], 4294966784  ;;  %s263_s0 = smov 0  }
   0xd LB: > { %s269_s1 = sshll.u32 %s232_s0, 3  ;;  %vm95_vm0 = vcmask 1040384   ;;  %vm97_vm1 = vcmask 1041408   ;;  %vm99_vm2 = vcmask 1042432   ;;  %vm101_vm3 = vcmask 1043456   ;;  %s40_s0 = sadd.s32 1, %s232_s0   ;;  %s232_s0 = sphi %s263_s0, %s40_s0  }
   0xe   : > { %s43_s20 = sld [smem:[#allocation3 + %s269_s1]]  ;;  %s46_s21 = sadd.s32 1, %s269_s1  ;;  %vm103_vm4 = vcmask 1044480   ;;  %vm105_vm5 = vcmask 1045504   ;;  %vm107_vm6 = vcmask 1046528  }
   0xf   : > { %s47_s22 = sld [smem:[#allocation3 + %s46_s21]]  ;;  %s50_s23 = sadd.s32 2, %s269_s1 }
  0x10   : > { %s51_s24 = sld [smem:[#allocation3 + %s50_s23]]  ;;  %s54_s25 = sadd.s32 3, %s269_s1 }
  0x11   : > { %s55_s26 = sld [smem:[#allocation3 + %s54_s25]]  ;;  %s58_s27 = sadd.s32 4, %s269_s1 }
  0x12   : > { %s59_s28 = sld [smem:[#allocation3 + %s58_s27]]  ;;  %s62_s29 = sadd.s32 5, %s269_s1 }
  0x13   : > { %s63_s30 = sld [smem:[#allocation3 + %s62_s29]]  ;;  %s66_s3 = sadd.s32 6, %s269_s1 }
  0x14   : > { %s67_s4 = sld [smem:[#allocation3 + %s66_s3]]  ;;  %s70_s5 = sadd.s32 7, %s269_s1 }
  0x15   : > { %s44_s6 = scalar_lea.vmem [#allocation4], %s43_s20  ;;  %s48_s7 = scalar_lea.vmem [#allocation4], %s47_s22 }
  0x16   : > { %v45_v0 = vld [vmem:[%s44_s6] sm:$0x1]  ;;  %s71_s8 = sld [smem:[#allocation3 + %s70_s5]]  ;;  %s52_s9 = scalar_lea.vmem [#allocation4], %s51_s24 }
  0x17   : > { %v49_v1 = vld [vmem:[%s48_s7] sm:$0x1]  ;;  %s56_s10 = scalar_lea.vmem [#allocation4], %s55_s26  ;;  %s110_s15 = scalar_lea.vmem [#allocation7], %s269_s1 }
  0x18   : > { %v53_v2 = vld [vmem:[%s52_s9] sm:$0x1]  ;;  %v75_v3 = vrot.slane %v49_v1, 7  ;;  %s60_s11 = scalar_lea.vmem [#allocation4], %s59_s28  ;;  %p37_p0 = scmp.ge.s32.totalorder %s40_s0, 2  }
  0x19   : > { %v57_v4 = vld [vmem:[%s56_s10] sm:$0x1]  ;;  %v78_v5 = vrot.slane %v53_v2, 6  ;;  %s64_s12 = scalar_lea.vmem [#allocation4], %s63_s30  ;;  %s118_s20 = sshll.u32 (%p37_p0), %s292_s2, 4  ;;  %s119_s20 = int_to_ptr.hbm [resolvable:$true] %s118_s20 }
  0x1a   : > { %v61_v6 = vld [vmem:[%s60_s11] sm:$0x1]  ;;  %v81_v7 = vrot.slane %v57_v4, 5  ;;  %v96_v8 = vsel %vm95_vm0, %v45_v0, %v75_v3  ;;  %s68_s13 = scalar_lea.vmem [#allocation4], %s67_s4  ;;  %s238_s21 = smov (%p37_p0), [#allocation7]  }
  0x1b   : > { %v65_v9 = vld [vmem:[%s64_s12] sm:$0x1]  ;;  %v84_v10 = vrot.slane %v61_v6, 4  ;;  %v98_v11 = vsel %vm97_vm1, %v96_v8, %v78_v5  ;;  %s116_s22 = sshll.u32 (%p37_p0), %s238_s21, 4  ;;  %s117_s22 = int_to_ptr.vmem [resolvable:$true] %s116_s22 }
  0x1c   : > { %v69_v12 = vld [vmem:[%s68_s13] sm:$0x1]  ;;  %v87_v13 = vrot.slane %v65_v9, 3  ;;  %v100_v14 = vsel %vm99_vm2, %v98_v11, %v81_v7  ;;  %s72_s14 = scalar_lea.vmem [#allocation4], %s71_s8 }
  0x1d   : > { %v90_v15 = vrot.slane %v69_v12, 2  ;;  %v102_v16 = vsel %vm101_vm3, %v100_v14, %v84_v10  ;;  %v73_v17 = vld [vmem:[%s72_s14] sm:$0x1] }
  0x1e   : > { %v104_v18 = vsel %vm103_vm4, %v102_v16, %v87_v13  ;;  %v93_v19 = vrot.slane %v73_v17, 1 }
  0x1f   : > { %v106_v20 = vsel %vm105_vm5, %v104_v18, %v90_v15  ;;  %39 = sbr.rel (!%p37_p0) target bundleno = 13 (0xd), region = 44 }
  0x20   : > { %v108_v21 = vsel %vm107_vm6, %v106_v20, %v93_v19 }
  0x21   : > { %v109_v22 = vmul.f32 11.313708, %v108_v21 }
  0x23   : > { %111 = vst [vmem:[%s110_s15] sm:$0xff] %v109_v22 }
  0x24   :  { %124 = dma.vmem_to_hbm [thread:$0]  %s117_s22, 256, %s119_s20, [#allocation6], %s236_s18, %s236_s18, %s237_s19  }
  0x25   :  { %228 = dma.done.wait [#allocation6], 256  }
  0x26   :  { %229 = vsyncadd [#allocation6], 4294967040 }
  0x27   :  { %129 = vsyncpa [#allocation5], 1 }
  0x28   :  { %130 = vsyncpa [#allocation6], 1 }

</bundles_post_ra>
